<compile_context>
chip_gen: v5e
topology: v5e:2x2
jax: 0.10.0
libtpu: 0.0.40
codegen_flags: <defaults>
</compile_context>

<pallas_src>
import jax
import jax.numpy as jnp
from jax.experimental import pallas as pl
from jax.experimental.pallas import tpu as pltpu


def _slattice_xui_kernel(u_ref, i_ref, xui_ref):
    """xui[0, j] = sum_d u[j, d] * v[j, d], emitted lane-dense as (1, tile_b)."""
    u = u_ref[...].astype(jnp.float32)
    v = i_ref[...].astype(jnp.float32)
    prod = u * v                                          # (tile_b, D) on the VPU
    ones_row = jnp.ones((1, prod.shape[1]), jnp.float32)  # (1, D)
    # NT contraction: ones(1, D) . prod(tile_b, D)^T -> (1, tile_b), f32 accumulate.
    row_sums = jax.lax.dot_general(
        ones_row,
        prod,
        dimension_numbers=(((1,), (1,)), ((), ())),
        preferred_element_type=jnp.float32,
    )
    xui_ref[...] = row_sums.astype(xui_ref.dtype)


def _squeeze_all_unit_dims(x):
    """torch.squeeze equivalent: drop every size-1 dimension."""
    shape = tuple(int(d) for d in x.shape if d != 1)
    return jnp.reshape(x, shape)


def _round_up(x, m):
    return ((x + m - 1) // m) * m


def _auto_tile_rows(depth, itemsize):
    # VMEM working set = 2 inputs x 2 pipeline buffers x tile_b x D x itemsize.
    # Budget ~24 MiB so the same tile also fits v7x's 64 MiB VMEM comfortably.
    budget = 24 * 1024 * 1024
    per_row = 4 * depth * itemsize
    cap = max(128, budget // max(per_row, 1))
    tile = min(2048, cap)
    return max(128, (tile // 128) * 128)


def slattice_forward(gum, gim, *, tile_b=None):
    """JAX/Pallas equivalent of SLATTICEModel.forward((gum, gim)).

    Args:
      gum: user embeddings for the batch, shape (B, D) (extra size-1 dims ok).
      gim: item embeddings for the batch, shape (B, D) (extra size-1 dims ok).
    Returns:
      (xui, gamma_u_m, gamma_i_m) with xui of shape (B,).
    """
    gamma_u = _squeeze_all_unit_dims(gum)
    gamma_i = _squeeze_all_unit_dims(gim)
    if gamma_u.ndim != 2 or gamma_u.shape != gamma_i.shape:
        # (Same restriction as the PyTorch module: torch.sum(..., 1) needs 2-D.)
        raise ValueError(
            f"expected matching 2-D embeddings, got {gamma_u.shape} / {gamma_i.shape}")

    B, D = gamma_u.shape
    out_dtype = jnp.promote_types(gamma_u.dtype, gamma_i.dtype)
    itemsize = max(jnp.dtype(gamma_u.dtype).itemsize,
                   jnp.dtype(gamma_i.dtype).itemsize)
    sublane = {4: 8, 2: 16, 1: 32}.get(itemsize, 8)

    if tile_b is None:
        tile_b = _auto_tile_rows(D, itemsize)
    if B <= tile_b:
        # Single grid step: full-array blocks (no 128-multiple requirement).
        tile_b = _round_up(B, sublane)
    else:
        # Multi-step grid: lane-dense xui blocks need tile_b % 128 == 0.
        tile_b = max(128, (tile_b // 128) * 128)

    b_pad = _round_up(B, tile_b)
    pad = b_pad - B
    if pad:
        gamma_u_p = jnp.pad(gamma_u, ((0, pad), (0, 0)))
        gamma_i_p = jnp.pad(gamma_i, ((0, pad), (0, 0)))
    else:
        gamma_u_p, gamma_i_p = gamma_u, gamma_i

    grid = (b_pad // tile_b,)
    xui_rows = pl.pallas_call(
        _slattice_xui_kernel,
        out_shape=jax.ShapeDtypeStruct((1, b_pad), out_dtype),
        grid=grid,
        in_specs=[
            pl.BlockSpec((tile_b, D), lambda b: (b, 0)),
            pl.BlockSpec((tile_b, D), lambda b: (b, 0)),
        ],
        out_specs=pl.BlockSpec((1, tile_b), lambda b: (0, b)),
        compiler_params=pltpu.CompilerParams(
            dimension_semantics=("parallel",),
            vmem_limit_bytes=48 * 1024 * 1024,
        ),
    )(gamma_u_p, gamma_i_p)

    xui = xui_rows[0, :B]
    # gamma passthroughs come straight from the (squeezed) inputs: no extra
    # HBM writes inside the kernel.
    return xui, gamma_u, gamma_i


def xavier_uniform(key, shape, dtype=jnp.float32):
    """Deterministic xavier-uniform init matching torch.nn.init.xavier_uniform_."""
    fan_in, fan_out = shape[1], shape[0]
    limit = jnp.sqrt(6.0 / (fan_in + fan_out))
    return jax.random.uniform(key, shape, dtype, minval=-limit, maxval=limit)


if __name__ == "__main__":
    # Small deterministic setup consistent with the module:
    #   num_users=8, num_items=16, embed_k=32, batch of 8 (user, pos) pairs.
    num_users, num_items, embed_k = 8, 16, 32
    batch = 8

    key = jax.random.PRNGKey(0)
    k_gu, k_gi, k_u, k_p, k_a, k_b = jax.random.split(key, 6)

    Gu = xavier_uniform(k_gu, (num_users, embed_k))
    Gi = xavier_uniform(k_gi, (num_items, embed_k))

    user = jax.random.randint(k_u, (batch,), 0, num_users)
    pos = jax.random.randint(k_p, (batch,), 0, num_items)

    # Glue: embedding gathers (done by train_step / propagate_embeddings indexing).
    gum = Gu[user]   # (batch, embed_k)
    gim = Gi[pos]    # (batch, embed_k)

    xui, gamma_u_m, gamma_i_m = slattice_forward(gum, gim)
    jax.block_until_ready((xui, gamma_u_m, gamma_i_m))

    ref_xui = jnp.sum(gum * gim, axis=1)
    assert xui.shape == (batch,)
    assert gamma_u_m.shape == (batch, embed_k)
    assert gamma_i_m.shape == (batch, embed_k)
    assert jnp.allclose(xui, ref_xui, atol=2e-2, rtol=2e-2)
    assert jnp.array_equal(gamma_u_m, gum)
    assert jnp.array_equal(gamma_i_m, gim)

    # Second config: exercises torch.squeeze of a unit dim, the multi-tile grid,
    # and the lane-dense (1, tile_b) output path.
    B2, D2 = 384, 128
    a2 = jax.random.normal(k_a, (B2, 1, D2), dtype=jnp.float32)
    b2 = jax.random.normal(k_b, (B2, 1, D2), dtype=jnp.float32)
    xui2, gu2, gi2 = slattice_forward(a2, b2, tile_b=128)
    jax.block_until_ready(xui2)

    ref2 = jnp.sum(a2[:, 0, :] * b2[:, 0, :], axis=1)
    assert xui2.shape == (B2,)
    assert gu2.shape == (B2, D2) and gi2.shape == (B2, D2)
    assert jnp.allclose(xui2, ref2, atol=1e-1, rtol=2e-2)

    print("KERNEL_OK")
</pallas_src>

<mosaic_0001>
module attributes {stable_mosaic.version = 11 : i64} {
  func.func @_slattice_xui_kernel(%arg0: i32, %arg1: memref<8x32xf32, #tpu.memory_space<vmem>>, %arg2: memref<8x32xf32, #tpu.memory_space<vmem>>, %arg3: memref<1x8xf32, #tpu.memory_space<vmem>>) attributes {dimension_semantics = [#tpu.dimension_semantics<parallel>], iteration_bounds = array<i64: 1>, scalar_prefetch = 0 : i64, scratch_operands = 0 : i64, tpu.core_type = #tpu.core_type<tc>, window_params = [{transform_indices = @transform_0, window_bounds = array<i64: 8, 32>}, {transform_indices = @transform_1, window_bounds = array<i64: 8, 32>}, {transform_indices = @transform_2, window_bounds = array<i64: 1, 8>}]} {
    %c0 = arith.constant 0 : index
    %c0_0 = arith.constant 0 : index
    %0 = vector.load %arg1[%c0, %c0_0] : memref<8x32xf32, #tpu.memory_space<vmem>>, vector<8x32xf32>
    %c0_1 = arith.constant 0 : index
    %c0_2 = arith.constant 0 : index
    %1 = vector.load %arg2[%c0_1, %c0_2] : memref<8x32xf32, #tpu.memory_space<vmem>>, vector<8x32xf32>
    %2 = arith.mulf %0, %1 : vector<8x32xf32>
    %cst = arith.constant 1.000000e+00 : f32
    %3 = vector.broadcast %cst : f32 to vector<1x32xf32>
    %cst_3 = arith.constant dense<0.000000e+00> : vector<1x8xf32>
    %4 = tpu.matmul %3, %2, %cst_3 {dimension_numbers = #tpu.dot_dimension_numbers<[1], [1], [0], [0], [0, 0, 1, 0], [], []>} : vector<1x32xf32>, vector<8x32xf32>, vector<1x8xf32> -> vector<1x8xf32>
    %c0_4 = arith.constant 0 : index
    %c0_5 = arith.constant 0 : index
    %5 = vector.load %arg3[%c0_4, %c0_5] : memref<1x8xf32, #tpu.memory_space<vmem>>, vector<1x8xf32>
    tpu.vector_store %arg3[%c0_4, %c0_5], %4 {strides = array<i32>} : memref<1x8xf32, #tpu.memory_space<vmem>>, vector<1x8xf32>,
    return
  }
  func.func @transform_0(%arg0: i32) -> (i32, i32) {
    %c0_i32 = arith.constant 0 : i32
    %c0_i32_0 = arith.constant 0 : i32
    return %arg0, %c0_i32 : i32, i32
  }
  func.func @transform_1(%arg0: i32) -> (i32, i32) {
    %c0_i32 = arith.constant 0 : i32
    %c0_i32_0 = arith.constant 0 : i32
    return %arg0, %c0_i32 : i32, i32
  }
  func.func @transform_2(%arg0: i32) -> (i32, i32) {
    %c0_i32 = arith.constant 0 : i32
    %c0_i32_0 = arith.constant 0 : i32
    return %c0_i32, %arg0 : i32, i32
  }
}

</mosaic_0001>

<bundles_post_ra>
// kernel: tpu_custom_call.1
= control target key start
LH: loop header
LB: loop body
LE: loop exit
PB: predicated region body
PF: predicated region fallthrough
CT: control target
= control target key end

     0   :  { %7 = vsyncpa [#allocation3], 0  ;;  %s202_s0 = inlined_call_operand.hbm [shape: f32[8,32], index: 0, kind: input, shape index: {}]   ;;  %s203_s1 = inlined_call_operand.hbm [shape: f32[8,32], index: 1, kind: input, shape index: {}]   ;;  %s204_s2 = inlined_call_operand.hbm [shape: f32[1,8], index: 2, kind: output, shape index: {}]  }
   0x1   :  { %8 = vsyncpa [#allocation6], 0 }
   0x2   :  { %9 = vsyncpa [#allocation4], 0  ;;  %s15_s11 = sshll.u32 %s202_s0, 4  ;;  %s174_s12 = smov [#allocation2]   ;;  %s16_s11 = int_to_ptr.hbm [resolvable:$true] %s15_s11 }
   0x3   :  { %s17_s13 = sshll.u32 %s174_s12, 4  ;;  %s26_s16 = sshll.u32 %s203_s1, 4  ;;  %s18_s13 = int_to_ptr.vmem [resolvable:$true] %s17_s13  ;;  %s27_s16 = int_to_ptr.hbm [resolvable:$true] %s26_s16 }
   0x4   :  { %20 = dma.hbm_to_vmem [thread:$0]  %s16_s11, 128, %s18_s13, [#allocation3]  }
   0x5   :  { %s175_s17 = smov [#allocation5]  }
   0x6   :  { %s28_s18 = sshll.u32 %s175_s17, 4  ;;  %s29_s18 = int_to_ptr.vmem [resolvable:$true] %s28_s18 }
   0x7   :  { %31 = dma.hbm_to_vmem [thread:$0]  %s27_s16, 128, %s29_s18, [#allocation6]  }
   0x8   :  { %168 = dma.done.wait [#allocation3], 128  }
   0x9   :  { %169 = vsyncadd [#allocation3], 4294967168 }
   0xa   :  { %170 = dma.done.wait [#allocation6], 128  }
   0xb   :  { %171 = vsyncadd [#allocation6], 4294967168  ;;  %v40_v0 = vld [vmem:[#allocation2] sm:$0xff]  ;;  %v41_v1 = vld [vmem:[#allocation5] sm:$0xff]  ;;  %vm43_vm0 = vcmask 261120   ;;  %v176_v3 = vmov 1.0  }
   0xc   :  { %v42_v2 = vmul.f32 %v41_v1, %v40_v0  ;;  %s177_s0 = smov [#allocation7]   ;;  %s79_s21 = sshll.u32 %s204_s2, 4  ;;  %vm70_vm1 = vcmask 57344   ;;  %s80_s21 = int_to_ptr.hbm [resolvable:$true] %s79_s21 }
   0xd   :  { %s77_s19 = sshll.u32 %s177_s0, 4  ;;  %s78_s19 = int_to_ptr.vmem [resolvable:$true] %s77_s19 }
   0xe   :  { %90 = vmatpush.xpose.msk.msra.mxu0 %vm43_vm0, %v42_v2 }
  0x11   :  { %91 = vmatmul.msk.f32.vlgmr.msra.gmra.mxu0 %vm43_vm0, %v176_v3 }
  0x8e   :  { %v67_v4 = vpop.f32.mrf.mxu0 }
  0x8f   :  { %71 = vst.msk [vmem:[#allocation7] sm:$0x1] %vm70_vm1, %v67_v4 }
  0x90   :  { %82 = dma.vmem_to_hbm [thread:$0]  %s78_s19, 16, %s80_s21, [#allocation4]  }
  0x91   :  { %172 = dma.done.wait [#allocation4], 16  }
  0x92   :  { %173 = vsyncadd [#allocation4], 4294967280 }
  0x93   :  { %87 = vsyncpa [#allocation3], 1 }
  0x94   :  { %88 = vsyncpa [#allocation6], 1 }
  0x95   :  { %89 = vsyncpa [#allocation4], 1 }

</bundles_post_ra>
